<compile_context>
chip_gen: v7x
topology: tpu7x:2x2x1
jax: 0.10.0
libtpu: 0.0.40
codegen_flags: <defaults>
</compile_context>

<pallas_src>
import math

import jax
import jax.numpy as jnp
from jax import lax
from jax.experimental import pallas as pl
from jax.experimental.pallas import tpu as pltpu

# ----------------------------- config (small) -----------------------------
B = 2          # batch
T = 8          # sequence length
N_EMBD = 32    # C
N_HEAD = 4
N_KV_HEAD = 2
D_HEAD = N_EMBD // N_HEAD          # 8
KV_DIM = N_KV_HEAD * D_HEAD        # 16  (per k / per v)
GROUP = N_HEAD // N_KV_HEAD        # 2   (query heads per kv head)
SCALE = 1.0 / math.sqrt(D_HEAD)
ATTN_BIAS = True
NEG_INF = -1e30

# parameter-slab layout (rows padded to multiples of 8, lanes to max width 64)
QKV_COLS = N_EMBD + 2 * KV_DIM     # 64
P_COLS = QKV_COLS                  # 64
ROW_WQKV = 0                       # rows  0:32  -> fused (wq|wkv)^T, SCALE folded into q cols
ROW_BQKV = N_EMBD                  # row  32     -> fused (bq|bkv),  SCALE folded into bq
ROW_WP = 40                        # rows 40:72  -> wp^T
ROW_BP = 72                        # row  72     -> bp
P_ROWS = 80


# ------------------------------- kernel -----------------------------------
def _gqa_kernel(x_ref, p_ref, o_ref):
    x = x_ref[...]                                               # (T, C)

    # static slices of the packed parameter slab (single DMA'd input)
    w_qkv = p_ref[ROW_WQKV:ROW_WQKV + N_EMBD, :]                 # (C, C + 2*KV_DIM)
    b_qkv = p_ref[ROW_BQKV:ROW_BQKV + 1, :]                      # (1, C + 2*KV_DIM)
    wp_t = p_ref[ROW_WP:ROW_WP + N_EMBD, :N_EMBD]                # (C, C)
    bp = p_ref[ROW_BP:ROW_BP + 1, :N_EMBD]                       # (1, C)

    # fused q/kv projection: one (T, C) @ (C, C + 2*KV_DIM) MXU push (+ bias)
    qkv = jnp.dot(x, w_qkv, preferred_element_type=jnp.float32) + b_qkv
    q = qkv[:, :N_EMBD]                                          # (T, C) -- pre-scaled
    k = qkv[:, N_EMBD:N_EMBD + KV_DIM]                           # (T, KV_DIM)
    v = qkv[:, N_EMBD + KV_DIM:]                                 # (T, KV_DIM)

    # plain causal additive mask (T, T), stacked along rows for GROUP q-heads
    row = lax.broadcasted_iota(jnp.int32, (T, T), 0)
    col = lax.broadcasted_iota(jnp.int32, (T, T), 1)
    mask_small = jnp.where(col <= row, 0.0, NEG_INF).astype(jnp.float32)
    mask_stack = jnp.concatenate([mask_small] * GROUP, axis=0)   # (GROUP*T, T)

    acc = jnp.zeros((T, N_EMBD), jnp.float32)

    for g in range(N_KV_HEAD):                                   # static, unrolled (2)
        k_g = k[:, g * D_HEAD:(g + 1) * D_HEAD]                  # (T, Dh)
        v_g = v[:, g * D_HEAD:(g + 1) * D_HEAD]                  # (T, Dh)

        # stack the GROUP query heads sharing kv head g along sublanes
        q_stack = jnp.concatenate(
            [q[:, (g * GROUP + hi) * D_HEAD:(g * GROUP + hi + 1) * D_HEAD]
             for hi in range(GROUP)], axis=0)                    # (GROUP*T, Dh)

        # scores: contract last dims directly (no explicit k_g.T / vxpose)
        s = lax.dot_general(q_stack, k_g,
                            dimension_numbers=(((1,), (1,)), ((), ())),
                            preferred_element_type=jnp.float32)  # (GROUP*T, T)
        s = s + mask_stack

        m = jnp.max(s, axis=-1, keepdims=True)
        p = jnp.exp(s - m)
        l = jnp.sum(p, axis=-1, keepdims=True)
        inv_l = pl.reciprocal(l, approx=True)                    # EUP slot
        # normalize on the small (GROUP*T, Dh) PV result, not the score slab
        y_stack = jnp.dot(p, v_g,
                          preferred_element_type=jnp.float32) * inv_l

        # accumulated partial output projections (no lane-axis concat)
        for hi in range(GROUP):
            h = g * GROUP + hi
            y_h = y_stack[hi * T:(hi + 1) * T, :]                # (T, Dh) sublane slice
            acc = acc + jnp.dot(y_h, wp_t[h * D_HEAD:(h + 1) * D_HEAD, :],
                                preferred_element_type=jnp.float32)

    o_ref[...] = (acc + bp).astype(o_ref.dtype)


# --------------------- one-time parameter preparation -----------------------
def prepare_params(params):
    """Hoisted out of the per-call path: transpose / fuse / fold SCALE / pack
    everything into one (P_ROWS, P_COLS) slab (single kernel input DMA)."""
    wq_t = params["wq"].T * SCALE                    # fold 1/sqrt(Dh) into q cols
    bq = params["bq"] * SCALE
    w_qkv = jnp.concatenate([wq_t, params["wkv"].T], axis=1)     # (C, C + 2*KV_DIM)
    b_qkv = jnp.concatenate([bq, params["bkv"]])                 # (C + 2*KV_DIM,)
    wp_t = params["wp"].T                                        # (C, C)
    bp = params["bp"]                                            # (C,)

    slab = jnp.zeros((P_ROWS, P_COLS), jnp.float32)
    slab = slab.at[ROW_WQKV:ROW_WQKV + N_EMBD, :QKV_COLS].set(w_qkv)
    slab = slab.at[ROW_BQKV, :QKV_COLS].set(b_qkv)
    slab = slab.at[ROW_WP:ROW_WP + N_EMBD, :N_EMBD].set(wp_t)
    slab = slab.at[ROW_BP, :N_EMBD].set(bp)
    return slab


# ------------------------------- wrapper -----------------------------------
@jax.jit
def causal_grouped_self_attention(x, param_slab):
    """x: (B, T, C) f32.  param_slab: (P_ROWS, P_COLS) from prepare_params."""
    x2 = x.reshape(B * T, N_EMBD)

    out = pl.pallas_call(
        _gqa_kernel,
        out_shape=jax.ShapeDtypeStruct((B * T, N_EMBD), x.dtype),
        grid=(B,),
        in_specs=[
            pl.BlockSpec((T, N_EMBD), lambda b: (b, 0)),         # per-batch x tile
            pl.BlockSpec((P_ROWS, P_COLS), lambda b: (0, 0)),    # resident param slab
        ],
        out_specs=pl.BlockSpec((T, N_EMBD), lambda b: (b, 0)),
        compiler_params=pltpu.CompilerParams(
            dimension_semantics=("parallel",)),                  # both TCs on v7x
    )(x2, param_slab)

    return out.reshape(B, T, N_EMBD)


# --------------------------- pure-JAX reference -----------------------------
def reference(x, params):
    q = x @ params["wq"].T + params["bq"]                        # (B, T, C)
    kv = x @ params["wkv"].T + params["bkv"]                     # (B, T, 2*KV_DIM)
    k, v = kv[..., :KV_DIM], kv[..., KV_DIM:]
    q = q.reshape(B, T, N_HEAD, D_HEAD).transpose(0, 2, 1, 3)            # (B, H, T, Dh)
    k = k.reshape(B, T, N_KV_HEAD, D_HEAD).transpose(0, 2, 1, 3)         # (B, Kvh, T, Dh)
    v = v.reshape(B, T, N_KV_HEAD, D_HEAD).transpose(0, 2, 1, 3)
    k = jnp.repeat(k, GROUP, axis=1)                                     # GQA expand
    v = jnp.repeat(v, GROUP, axis=1)
    s = jnp.einsum("bhtd,bhsd->bhts", q, k) * SCALE
    causal = jnp.tril(jnp.ones((T, T), dtype=bool))
    s = jnp.where(causal, s, -jnp.inf)
    p = jax.nn.softmax(s, axis=-1)
    y = jnp.einsum("bhts,bhsd->bhtd", p, v)
    y = y.transpose(0, 2, 1, 3).reshape(B, T, N_EMBD)
    return y @ params["wp"].T + params["bp"]


# --------------------------------- main -------------------------------------
if __name__ == "__main__":
    key = jax.random.PRNGKey(0)
    kx, k1, k2, k3, k4, k5, k6 = jax.random.split(key, 7)

    x = jax.random.normal(kx, (B, T, N_EMBD), dtype=jnp.float32)

    # deterministic parameter init (PyTorch Linear layout: weight = (out, in))
    params = {
        "wq":  0.02 * jax.random.normal(k1, (N_EMBD, N_EMBD), jnp.float32),
        "bq":  0.01 * jax.random.normal(k2, (N_EMBD,), jnp.float32) if ATTN_BIAS
               else jnp.zeros((N_EMBD,), jnp.float32),
        "wkv": 0.02 * jax.random.normal(k3, (2 * KV_DIM, N_EMBD), jnp.float32),
        "bkv": 0.01 * jax.random.normal(k4, (2 * KV_DIM,), jnp.float32) if ATTN_BIAS
               else jnp.zeros((2 * KV_DIM,), jnp.float32),
        "wp":  0.02 * jax.random.normal(k5, (N_EMBD, N_EMBD), jnp.float32),
        "bp":  0.01 * jax.random.normal(k6, (N_EMBD,), jnp.float32) if ATTN_BIAS
               else jnp.zeros((N_EMBD,), jnp.float32),
    }

    # one-time parameter fusion/packing (outside the per-call path)
    param_slab = jax.block_until_ready(prepare_params(params))

    out = causal_grouped_self_attention(x, param_slab)
    out = jax.block_until_ready(out)

    ref = reference(x, params)
    assert out.shape == (B, T, N_EMBD)
    # slightly relaxed vs f32 exact to accommodate the EUP approx reciprocal
    assert jnp.allclose(out, ref, atol=5e-4, rtol=1e-3), \
        f"max err {jnp.max(jnp.abs(out - ref))}"

    print("KERNEL_OK")
</pallas_src>

<mosaic_0001>
module attributes {stable_mosaic.version = 11 : i64} {
  func.func @_gqa_kernel(%arg0: i32, %arg1: memref<8x32xf32, #tpu.memory_space<vmem>>, %arg2: memref<80x64xf32, #tpu.memory_space<vmem>>, %arg3: memref<8x32xf32, #tpu.memory_space<vmem>>) attributes {dimension_semantics = [#tpu.dimension_semantics<parallel>], iteration_bounds = array<i64: 2>, scalar_prefetch = 0 : i64, scratch_operands = 0 : i64, tpu.core_type = #tpu.core_type<tc>, window_params = [{transform_indices = @transform_0, window_bounds = array<i64: 8, 32>}, {pipeline_mode = #tpu.pipeline_mode<synchronous>, transform_indices = @transform_1, window_bounds = array<i64: 80, 64>}, {transform_indices = @transform_2, window_bounds = array<i64: 8, 32>}]} {
    %c0 = arith.constant 0 : index
    %c0_0 = arith.constant 0 : index
    %0 = vector.load %arg1[%c0, %c0_0] : memref<8x32xf32, #tpu.memory_space<vmem>>, vector<8x32xf32>
    %c0_1 = arith.constant 0 : index
    %c0_2 = arith.constant 0 : index
    %1 = vector.load %arg2[%c0_1, %c0_2] : memref<80x64xf32, #tpu.memory_space<vmem>>, vector<32x64xf32>
    %c32 = arith.constant 32 : index
    %c0_3 = arith.constant 0 : index
    %2 = vector.load %arg2[%c32, %c0_3] : memref<80x64xf32, #tpu.memory_space<vmem>>, vector<1x64xf32>
    %c40 = arith.constant 40 : index
    %c0_4 = arith.constant 0 : index
    %3 = vector.load %arg2[%c40, %c0_4] : memref<80x64xf32, #tpu.memory_space<vmem>>, vector<32x32xf32>
    %c72 = arith.constant 72 : index
    %c0_5 = arith.constant 0 : index
    %4 = vector.load %arg2[%c72, %c0_5] : memref<80x64xf32, #tpu.memory_space<vmem>>, vector<1x32xf32>
    %cst = arith.constant dense<0.000000e+00> : vector<8x64xf32>
    %5 = tpu.matmul %0, %1, %cst {dimension_numbers = #tpu.dot_dimension_numbers<[1], [0], [0], [1], [0, 0, 1, 1], [], []>} : vector<8x32xf32>, vector<32x64xf32>, vector<8x64xf32> -> vector<8x64xf32>
    %6 = vector.broadcast %2 : vector<1x64xf32> to vector<8x64xf32>
    %7 = arith.addf %5, %6 : vector<8x64xf32>
    %8 = vector.extract_strided_slice %7 {offsets = [0, 0], sizes = [8, 32], strides = [1, 1]} : vector<8x64xf32> to vector<8x32xf32>
    %9 = vector.extract_strided_slice %7 {offsets = [0, 32], sizes = [8, 16], strides = [1, 1]} : vector<8x64xf32> to vector<8x16xf32>
    %10 = vector.extract_strided_slice %7 {offsets = [0, 48], sizes = [8, 16], strides = [1, 1]} : vector<8x64xf32> to vector<8x16xf32>
    %11 = tpu.iota {dimensions = array<i32: 0>} : vector<8x8xi32>
    %12 = tpu.iota {dimensions = array<i32: 1>} : vector<8x8xi32>
    %13 = arith.cmpi sle, %12, %11 : vector<8x8xi32>
    %cst_6 = arith.constant 0.000000e+00 : f32
    %cst_7 = arith.constant -1.000000e+30 : f32
    %14 = vector.broadcast %cst_6 : f32 to vector<8x8xf32>
    %15 = vector.broadcast %cst_7 : f32 to vector<8x8xf32>
    %16 = arith.select %13, %14, %15 : vector<8x8xi1>, vector<8x8xf32>
    %17 = tpu.concatenate %16, %16 in 0 : vector<8x8xf32>, vector<8x8xf32> -> vector<16x8xf32>
    %cst_8 = arith.constant 0.000000e+00 : f32
    %18 = vector.broadcast %cst_8 : f32 to vector<8x32xf32>
    %19 = vector.extract_strided_slice %9 {offsets = [0, 0], sizes = [8, 8], strides = [1, 1]} : vector<8x16xf32> to vector<8x8xf32>
    %20 = vector.extract_strided_slice %10 {offsets = [0, 0], sizes = [8, 8], strides = [1, 1]} : vector<8x16xf32> to vector<8x8xf32>
    %21 = vector.extract_strided_slice %8 {offsets = [0, 0], sizes = [8, 8], strides = [1, 1]} : vector<8x32xf32> to vector<8x8xf32>
    %22 = vector.extract_strided_slice %8 {offsets = [0, 8], sizes = [8, 8], strides = [1, 1]} : vector<8x32xf32> to vector<8x8xf32>
    %23 = tpu.concatenate %21, %22 in 0 : vector<8x8xf32>, vector<8x8xf32> -> vector<16x8xf32>
    %cst_9 = arith.constant dense<0.000000e+00> : vector<16x8xf32>
    %24 = tpu.matmul %23, %19, %cst_9 {dimension_numbers = #tpu.dot_dimension_numbers<[1], [1], [0], [0], [0, 0, 1, 0], [], []>} : vector<16x8xf32>, vector<8x8xf32>, vector<16x8xf32> -> vector<16x8xf32>
    %25 = arith.addf %24, %17 : vector<16x8xf32>
    %cst_10 = arith.constant dense<0xFF800000> : vector<16xf32>
    %26 = vector.multi_reduction <maximumf>, %25, %cst_10 [1] : vector<16x8xf32> to vector<16xf32>
    %27 = vector.shape_cast %26 : vector<16xf32> to vector<16x1xf32>
    %28 = vector.broadcast %27 : vector<16x1xf32> to vector<16x8xf32>
    %29 = arith.subf %25, %28 : vector<16x8xf32>
    %30 = math.exp %29 : vector<16x8xf32>
    %cst_11 = arith.constant dense<0.000000e+00> : vector<16xf32>
    %31 = vector.multi_reduction <add>, %30, %cst_11 [1] : vector<16x8xf32> to vector<16xf32>
    %32 = vector.shape_cast %31 : vector<16xf32> to vector<16x1xf32>
    %33 = tpu.reciprocal %32 {approx = true} : vector<16x1xf32> -> vector<16x1xf32>
    %cst_12 = arith.constant dense<0.000000e+00> : vector<16x8xf32>
    %34 = tpu.matmul %30, %20, %cst_12 {dimension_numbers = #tpu.dot_dimension_numbers<[1], [0], [0], [1], [0, 0, 1, 1], [], []>} : vector<16x8xf32>, vector<8x8xf32>, vector<16x8xf32> -> vector<16x8xf32>
    %35 = vector.broadcast %33 : vector<16x1xf32> to vector<16x8xf32>
    %36 = arith.mulf %34, %35 : vector<16x8xf32>
    %37 = vector.extract_strided_slice %36 {offsets = [0, 0], sizes = [8, 8], strides = [1, 1]} : vector<16x8xf32> to vector<8x8xf32>
    %38 = vector.extract_strided_slice %3 {offsets = [0, 0], sizes = [8, 32], strides = [1, 1]} : vector<32x32xf32> to vector<8x32xf32>
    %cst_13 = arith.constant dense<0.000000e+00> : vector<8x32xf32>
    %39 = tpu.matmul %37, %38, %cst_13 {dimension_numbers = #tpu.dot_dimension_numbers<[1], [0], [0], [1], [0, 0, 1, 1], [], []>} : vector<8x8xf32>, vector<8x32xf32>, vector<8x32xf32> -> vector<8x32xf32>
    %40 = arith.addf %18, %39 : vector<8x32xf32>
    %41 = vector.extract_strided_slice %36 {offsets = [8, 0], sizes = [8, 8], strides = [1, 1]} : vector<16x8xf32> to vector<8x8xf32>
    %42 = vector.extract_strided_slice %3 {offsets = [8, 0], sizes = [8, 32], strides = [1, 1]} : vector<32x32xf32> to vector<8x32xf32>
    %cst_14 = arith.constant dense<0.000000e+00> : vector<8x32xf32>
    %43 = tpu.matmul %41, %42, %cst_14 {dimension_numbers = #tpu.dot_dimension_numbers<[1], [0], [0], [1], [0, 0, 1, 1], [], []>} : vector<8x8xf32>, vector<8x32xf32>, vector<8x32xf32> -> vector<8x32xf32>
    %44 = arith.addf %40, %43 : vector<8x32xf32>
    %45 = vector.extract_strided_slice %9 {offsets = [0, 8], sizes = [8, 8], strides = [1, 1]} : vector<8x16xf32> to vector<8x8xf32>
    %46 = vector.extract_strided_slice %10 {offsets = [0, 8], sizes = [8, 8], strides = [1, 1]} : vector<8x16xf32> to vector<8x8xf32>
    %47 = vector.extract_strided_slice %8 {offsets = [0, 16], sizes = [8, 8], strides = [1, 1]} : vector<8x32xf32> to vector<8x8xf32>
    %48 = vector.extract_strided_slice %8 {offsets = [0, 24], sizes = [8, 8], strides = [1, 1]} : vector<8x32xf32> to vector<8x8xf32>
    %49 = tpu.concatenate %47, %48 in 0 : vector<8x8xf32>, vector<8x8xf32> -> vector<16x8xf32>
    %cst_15 = arith.constant dense<0.000000e+00> : vector<16x8xf32>
    %50 = tpu.matmul %49, %45, %cst_15 {dimension_numbers = #tpu.dot_dimension_numbers<[1], [1], [0], [0], [0, 0, 1, 0], [], []>} : vector<16x8xf32>, vector<8x8xf32>, vector<16x8xf32> -> vector<16x8xf32>
    %51 = arith.addf %50, %17 : vector<16x8xf32>
    %cst_16 = arith.constant dense<0xFF800000> : vector<16xf32>
    %52 = vector.multi_reduction <maximumf>, %51, %cst_16 [1] : vector<16x8xf32> to vector<16xf32>
    %53 = vector.shape_cast %52 : vector<16xf32> to vector<16x1xf32>
    %54 = vector.broadcast %53 : vector<16x1xf32> to vector<16x8xf32>
    %55 = arith.subf %51, %54 : vector<16x8xf32>
    %56 = math.exp %55 : vector<16x8xf32>
    %cst_17 = arith.constant dense<0.000000e+00> : vector<16xf32>
    %57 = vector.multi_reduction <add>, %56, %cst_17 [1] : vector<16x8xf32> to vector<16xf32>
    %58 = vector.shape_cast %57 : vector<16xf32> to vector<16x1xf32>
    %59 = tpu.reciprocal %58 {approx = true} : vector<16x1xf32> -> vector<16x1xf32>
    %cst_18 = arith.constant dense<0.000000e+00> : vector<16x8xf32>
    %60 = tpu.matmul %56, %46, %cst_18 {dimension_numbers = #tpu.dot_dimension_numbers<[1], [0], [0], [1], [0, 0, 1, 1], [], []>} : vector<16x8xf32>, vector<8x8xf32>, vector<16x8xf32> -> vector<16x8xf32>
    %61 = vector.broadcast %59 : vector<16x1xf32> to vector<16x8xf32>
    %62 = arith.mulf %60, %61 : vector<16x8xf32>
    %63 = vector.extract_strided_slice %62 {offsets = [0, 0], sizes = [8, 8], strides = [1, 1]} : vector<16x8xf32> to vector<8x8xf32>
    %64 = vector.extract_strided_slice %3 {offsets = [16, 0], sizes = [8, 32], strides = [1, 1]} : vector<32x32xf32> to vector<8x32xf32>
    %cst_19 = arith.constant dense<0.000000e+00> : vector<8x32xf32>
    %65 = tpu.matmul %63, %64, %cst_19 {dimension_numbers = #tpu.dot_dimension_numbers<[1], [0], [0], [1], [0, 0, 1, 1], [], []>} : vector<8x8xf32>, vector<8x32xf32>, vector<8x32xf32> -> vector<8x32xf32>
    %66 = arith.addf %44, %65 : vector<8x32xf32>
    %67 = vector.extract_strided_slice %62 {offsets = [8, 0], sizes = [8, 8], strides = [1, 1]} : vector<16x8xf32> to vector<8x8xf32>
    %68 = vector.extract_strided_slice %3 {offsets = [24, 0], sizes = [8, 32], strides = [1, 1]} : vector<32x32xf32> to vector<8x32xf32>
    %cst_20 = arith.constant dense<0.000000e+00> : vector<8x32xf32>
    %69 = tpu.matmul %67, %68, %cst_20 {dimension_numbers = #tpu.dot_dimension_numbers<[1], [0], [0], [1], [0, 0, 1, 1], [], []>} : vector<8x8xf32>, vector<8x32xf32>, vector<8x32xf32> -> vector<8x32xf32>
    %70 = arith.addf %66, %69 : vector<8x32xf32>
    %71 = vector.broadcast %4 : vector<1x32xf32> to vector<8x32xf32>
    %72 = arith.addf %70, %71 : vector<8x32xf32>
    %c0_21 = arith.constant 0 : index
    %c0_22 = arith.constant 0 : index
    %73 = vector.load %arg3[%c0_21, %c0_22] : memref<8x32xf32, #tpu.memory_space<vmem>>, vector<8x32xf32>
    tpu.vector_store %arg3[%c0_21, %c0_22], %72 {strides = array<i32>} : memref<8x32xf32, #tpu.memory_space<vmem>>, vector<8x32xf32>,
    return
  }
  func.func @transform_0(%arg0: i32) -> (i32, i32) {
    %c0_i32 = arith.constant 0 : i32
    %c0_i32_0 = arith.constant 0 : i32
    return %arg0, %c0_i32 : i32, i32
  }
  func.func @transform_1(%arg0: i32) -> (i32, i32) {
    %c0_i32 = arith.constant 0 : i32
    %c0_i32_0 = arith.constant 0 : i32
    %c0_i32_1 = arith.constant 0 : i32
    return %c0_i32, %c0_i32_0 : i32, i32
  }
  func.func @transform_2(%arg0: i32) -> (i32, i32) {
    %c0_i32 = arith.constant 0 : i32
    %c0_i32_0 = arith.constant 0 : i32
    return %arg0, %c0_i32 : i32, i32
  }
}

</mosaic_0001>

<bundles_post_ra>
// kernel: causal_grouped_self_attention.1
= control target key start
LH: loop header
LB: loop body
LE: loop exit
PB: predicated region body
PF: predicated region fallthrough
CT: control target
= control target key end

     0   :  { %7 = vsyncpa [#allocation3], 0  ;;  %s1438_s0 = inlined_call_operand.vmem [shape: f32[16,32], index: 0, kind: input, shape index: {}]   ;;  %s1439_s1 = inlined_call_operand.vmem [shape: f32[80,64], index: 1, kind: input, shape index: {}]   ;;  %s1440_s2 = inlined_call_operand.hbm [shape: f32[16,32], index: 2, kind: output, shape index: {}]  }
   0x1   :  { %9 = vsyncpa [#allocation3 + $0x1], 0  ;;  %s1257_s9 = smov 0   ;;  %s1259_s10 = smov 0  }
   0x2   :  { %s1261_s11 = smov 0   ;;  %s1263_s12 = smov 0  }
   0x3 LB: > { %s1278_s13 = sadd.s32 4294967295, %s1229_s12   ;;  %s993_s14 = sadd.s32 4294967294, %s1229_s12   ;;  %s1229_s12 = sphi %s1263_s12, %s1446_s12   ;;  %s1225_s11 = sphi %s1261_s11, %s1445_s11   ;;  %s1221_s10 = sphi %s1259_s10, %s1444_s10   ;;  %s1217_s9 = sphi %s1257_s9, %s1443_s9  }
   0x4   : > { %s1282_s15 = sadd.s32 1, %s1229_s12   ;;  %s69_s16 = sadd.s32 1, %s1225_s11 }
   0x5   : > { %s66_s17 = ssub.s32 %s1229_s12, %s1282_s15  ;;  %p79_p0 = scmp.ne.s32.totalorder %s1225_s11, %s1221_s10 }
   0x6   : > { %p67_p1 = scmp.eq.s32.totalorder %s66_s17, 0  ;;  %p80_p2 = scmp.eq.s32.totalorder %s1278_s13, 1 }
   0x7   : > { %p85_p3 = scmp.ne.s32.totalorder %s1221_s10, %s1217_s9  ;;  %p86_p4 = scmp.eq.s32.totalorder %s993_s14, 1 }
   0x8   : > { %s1293_s18 = scalar_select %p67_p1, %s1225_s11, %s69_s16  }
   0x9   : > { %p1295_p5 = por %p80_p2, %p79_p0  ;;  %p1299_p6 = por %p86_p4, %p85_p3 }
   0xa   : > { %p996_p7 = scmp.ge.s32.totalorder %s1229_s12, 1  ;;  %p114_p8 = scmp.lt.s32.totalorder %s1229_s12, 3 }
   0xc   : > { %p115_p9 = pnand %p996_p7, %p114_p8 }
   0xd   : > { %v140_v0 = vld [vmem:[%s1439_s1] sm:$0xff] (!%p115_p9)  ;;  %v141_v1 = vld [vmem:[%s1439_s1 + $0x8] sm:$0xff] (!%p115_p9)  ;;  %v142_v2 = vld [vmem:[%s1439_s1 + $0x10] sm:$0xff] (!%p115_p9)  ;;  %v1231_v3 = vmov (!%p115_p9), 0.0|0.0   ;;  %vm1232_vm0 = vmmov (!%p115_p9), 0   ;;  %v1233_v6 = vmov (!%p115_p9), 0.0   ;;  %v228_v18 = vlaneseq (!%p115_p9) }
   0xe   : > { %118 = sbr.rel (%p115_p9) target bundleno = 1775 (0x6ef), region = 28  ;;  %1096 = vmatprep.subr.bf16.mxu0 (!%p115_p9), %v1231_v3  ;;  %v1097_v4 = vpack.c.bf16 (!%p115_p9), %v141_v1, %v140_v0  ;;  %v143_v5 = vld [vmem:[%s1439_s1 + $0x18] sm:$0xff] (!%p115_p9)  ;;  %1053 = vmatprep.mubr.msk.f32.mxu0 (!%p115_p9), %vm1232_vm0, %v1233_v6  ;;  %p135_p10 = scmp.lt.s32.totalorder (!%p115_p9), %s1278_s13, 1  ;;  %vm154_vm1 = vcmask (!%p115_p9), 261120   ;;  %v999_v9 = vld [vmem:[%s1439_s1 + $0x20] ss:$0 sm:$0xff] (!%p115_p9) }
   0xf   : > { %v1100_v7 = vpack.c.bf16 (!%p115_p9), %v143_v5, %v142_v2  ;;  %v146_v10 = vld [vmem:[%s1439_s1 + $0x30] sm:$0xff] (!%p115_p9)  ;;  %vm239_vm2 = vcmask (!%p115_p9), 64512   ;;  %s1234_s16 = smov (!%p115_p9), 96   ;;  %s1235_s17 = smov (!%p115_p9), 120   ;;  %v229_v19 = vshrl.u32 (!%p115_p9), %v228_v18, 7  ;;  %v231_v20 = vand.u32 (!%p115_p9), 127, %v228_v18 }
  0x10   : > { %1098 = vmatpush3.bf16.msra.mxu0 (!%p115_p9), %v1097_v4  ;;  %s1236_s21 = smov (!%p115_p9), 80   ;;  %s1237_s22 = smov (!%p115_p9), 88   ;;  %v1239_v21 = vmov (!%p115_p9), -1e+30   ;;  %v145_v39 = vld [vmem:[%s1439_s1 + $0x28] sm:$0xff] (!%p115_p9) }
  0x11   : > { %1099 = vmatprep.subr.bf16.mxu0 (!%p115_p9), %v1231_v3  ;;  %s1238_s23 = smov (!%p115_p9), 112   ;;  %vm232_vm3 = vcmp.le.s32.totalorder (!%p115_p9), %v231_v20, %v229_v19  ;;  %s1240_s26 = smov (!%p115_p9), 72  }
  0x12   : > { %v233_v22 = vsel (!%p115_p9), %vm232_vm3, 0.0, %v1239_v21  ;;  %s132_s3 = sand.u32 (!%p115_p9), 1, %s1221_s10   ;;  %s1017_s7 = sshll.u32 (!%p115_p9), %s1278_s13, 7 }
  0x13   : > { %s997_s4 = sshll.u32 (!%p115_p9), %s132_s3, 3 }
  0x14   : > { %1101 = vmatpush3.bf16.msra.mxu0 (!%p115_p9), %v1100_v7  ;;  %s134_s8 = scalar_lea.vmem (!%p115_p9), [#allocation2], %s997_s4 }
  0x15   : > { %s136_s29 = scalar_select %p135_p10, %s1278_s13, 1  ;;  %1066 = vmatprep.subr.mxu0 %v1233_v6 }
  0x16   : > { %s934_s14 = sshll.u32 %s134_s8, 4  ;;  %s1241_s13 = smov [#allocation2]   ;;  %s1397_s14 = int_to_ptr.vmem [resolvable:$true] %s934_s14 }
  0x17   : > { %s998_s30 = sshll.u32 %s136_s29, 3  ;;  %s1171_s24 = sshll.u32 %s1241_s13, 4  ;;  %s1172_s24 = int_to_ptr.vmem [resolvable:$false] %s1171_s24 }
  0x18   : > { %s138_s5 = scalar_lea.vmem %s1438_s0, %s998_s30  ;;  %s1173_s25 = scalar_lea.vmem %s1172_s24, 256 }
  0x19   : > { %v139_v8 = vld [vmem:[%s138_s5] sm:$0xff]  ;;  %p1174_p0 = scmp.lt.s32.totalorder %s1397_s14, %s1172_s24 }
  0x1a   : > { %1054 = vmatmul.mubr.msk.f32.vlgmr.msra.gmra.mrb[0].mxu0 %vm154_vm1, %v139_v8 }
  0x1b   : > { %1068 = vmatprep.mubr.msk.f32.mxu0 %vm1232_vm0, %v1233_v6  ;;  %1067 = vmatpush3.msra.mxu0 %v146_v10  ;;  %v148_v10 = vld [vmem:[%s1439_s1 + $0x40] sm:$0xff] }
  0xed   : > { %v224_v11 = vpop.f32.mrb[0].mxu0 }
  0xee   : > { %v1334_v12 = vadd.f32 %v999_v9, %v224_v11  ;;  %v1055_v13 = vpop.f32.mrb[1].mxu0  ;;  %v147_v9 = vld [vmem:[%s1439_s1 + $0x38] sm:$0xff] }
  0xf0   : > { %237 = vrot.lane.b32.xlu0 %v1334_v12, %s1234_s16  ;;  %1058 = vmatprep.mubr.msk.f32.mxu1 %vm239_vm2, %v1334_v12 }
  0xf4   : > { %235 = vrot.lane.b32.xlu0 %v1334_v12, %s1235_s17 }
  0xf8   : > { %341 = vrot.lane.b32.xlu0 %v1334_v12, %s1236_s21  ;;  %s1395_s21 = scalar_lea.hbm %s1440_s2, %s1017_s7 }
  0xfc   : > { %577 = vrot.lane.b32.xlu0 %v1334_v12, %s1237_s22  ;;  %s921_s22 = scalar_lea.sflag [#allocation3], %s132_s3 }
 0x162   : > { %v238_v14 = vpop.permute.xlu0 %237 }
 0x163   : > { %1056 = vmatprep.subr.msk.mxu1 %vm239_vm2, %v238_v14 }
 0x164   : > { %1057 = vmatpush3.xpose.msk.msra.mxu1 %vm239_vm2, %v238_v14 }
 0x166   : > { %v236_v15 = vpop.permute.xlu0 %235 }
 0x167   : > { %575 = vrot.lane.b32.xlu0 %v236_v15, %s1238_s23  ;;  %1059 = vmatmul.mubr.msk.f32.vlgmr.msra.gmra.mrb[0].mxu1 %vm239_vm2, %v236_v15 }
 0x16a   : > { %v342_v16 = vpop.permute.xlu0 %341 }
 0x16b   : > { %1061 = vmatprep.subr.mxu1 %v342_v16 }
 0x16c   : > { %1062 = vmatpush3.msra.mxu1 %v342_v16 }
 0x16d   : > { %1071 = vmatprep.subr.mxu1 %v1233_v6 }
 0x16e   : > { %v578_v17 = vpop.permute.xlu0 %577 }
 0x16f   : > { %1076 = vmatprep.subr.msk.mxu0 %vm239_vm2, %v578_v17 }
 0x1d9   : > { %v576_v40 = vpop.permute.xlu0 %575 }
 0x23a   : > { %v1060_v23 = vpop.f32.mrb[0].mxu1 }
 0x23b   : > { %v312_v24 = vpop.f32.mrb[1].mxu1  ;;  %v318_v26 = vadd.f32 %v1060_v23, %v233_v22  ;;  %v1015_v23 = vld [vmem:[%s1439_s1 + $0x48] ss:$0 sm:$0xff] }
 0x23c   : > { %v313_v25 = vadd.f32 %v312_v24, %v233_v22 }
 0x23d   : > { %v324_v28 = vsel %vm239_vm2, %v318_v26, -inf }
 0x23e   : > { %v321_v27 = vsel %vm239_vm2, %v313_v25, -inf }
 0x23f   : > { %322 = vmax.xlane.f32.xlu1 %v321_v27 }
 0x243   : > { %325 = vmax.xlane.f32.xlu1 %v324_v28 }
 0x2cc   : > { %v323_v29 = vpop.xlane.xlu1 %322 }
 0x2cd   : > { %v327_v30 = vsub.f32 %v313_v25, %v323_v29 }
 0x2cf   : > { %v329_v31 = vmul.f32 1.442695, %v327_v30 }
 0x2d0   : > { %v326_v32 = vpop.xlane.xlu1 %325 }
 0x2d1   : > { %1151 = vpow2.f32 %v329_v31  ;;  %v328_v33 = vsub.f32 %v318_v26, %v326_v32 }
 0x2d3   : > { %v331_v34 = vmul.f32 1.442695, %v328_v33 }
 0x2d5   : > { %1153 = vpow2.f32 %v331_v34 }
 0x2db   : > { %v1152_v35 = vpop.eup %1151 }
 0x2dc   : > { %1063 = vmatprep.mubr.msk.f32.mxu1 %vm239_vm2, %v1152_v35  ;;  %v333_v36 = vsel %vm239_vm2, %v1152_v35, 0.0 }
 0x2dd   : > { %334 = vadd.xlane.f32.xlu0 %v333_v36 }
 0x2df   : > { %v1154_v37 = vpop.eup %1153 }
 0x2e0   : > { %1064 = vmatmul.mubr.msk.f32.vlgmr.msra.gmra.mrb[2].mxu1 %vm239_vm2, %v1154_v37  ;;  %v336_v38 = vsel %vm239_vm2, %v1154_v37, 0.0 }
 0x2e1   : > { %337 = vadd.xlane.f32.xlu1 %v336_v38  ;;  %1073 = vmatprep.mubr.msk.f32.mxu1 %vm1232_vm0, %v1233_v6 }
 0x2e2   : > { %1072 = vmatpush3.msra.mxu1 %v145_v39 }
 0x2f2   : > { %573 = vrot.lane.b32.xlu1 %v1334_v12, %s1238_s23  ;;  %s1167_s23 = scalar_lea.vmem %s1397_s14, 128 }
 0x2f3   : > { %p1168_p11 = scmp.ne.s32.totalorder %s1397_s14, %s1167_s23  ;;  %p1175_p1 = scmp.lt.s32.totalorder %s1173_s25, %s1167_s23 }
 0x2f5   : > { %p1169_p12 = pnand %p1168_p11, %p1295_p5  ;;  %p1176_p2 = por %p1175_p1, %p1174_p0 }
 0x2f7   : > { %p1170_p13 = pneg %p1169_p12 }
 0x2f9   : > { %p1177_p3 = pnand %p1176_p2, %p1170_p13 }
 0x36a   : > { %v335_v42 = vpop.xlane.xlu0 %334 }
 0x36e   : > { %v338_v41 = vpop.xlane.xlu1 %337 }
 0x36f   : > { %1155 = vrcp.f32 %v338_v41 }
 0x370   : > { %1157 = vrcp.f32 %v335_v42 }
 0x372   : > { %v574_v49 = vpop.permute.xlu1 %573 }
 0x379   : > { %v1156_v43 = vpop.eup %1155 }
 0x37a   : > { %v1158_v45 = vpop.eup %1157 }
 0x3b3   : > { %v1065_v44 = vpop.f32.mrb[2].mxu1 }
 0x3b4   : > { %v426_v46 = vmul.f32 %v1156_v43, %v1065_v44  ;;  %v416_v47 = vpop.f32.mrb[3].mxu1 }
 0x3b5   : > { %v425_v48 = vmul.f32 %v1158_v45, %v416_v47 }
 0x3b6   : > { %1069 = vmatmul.mubr.msk.f32.vlgmr.msra.gmra.mrb[2].mxu0 %vm239_vm2, %v426_v46 }
 0x3b7   : > { %1077 = vmatpush3.xpose.msk.msra.mxu0 %vm239_vm2, %v578_v17  ;;  %1074 = vmatmul.mubr.msk.f32.vlgmr.msra.gmra.mrb[4].mxu1 %vm239_vm2, %v425_v48 }
 0x3b8   : > { %1078 = vmatprep.mubr.msk.f32.mxu0 %vm239_vm2, %v574_v49  ;;  %1086 = vmatprep.subr.mxu0 %v1233_v6 }
 0x3ba   : > { %1079 = vmatmul.mubr.msk.f32.vlgmr.msra.gmra.mrb[4].mxu0 %vm239_vm2, %v576_v40 }
 0x3bb   : > { %1088 = vmatprep.mubr.msk.f32.mxu0 %vm1232_vm0, %v1233_v6  ;;  %1087 = vmatpush3.msra.mxu0 %v147_v9 }
 0x489   : > { %v496_v50 = vpop.f32.mrb[2].mxu0 }
 0x48a   : > { %v1070_v51 = vpop.f32.mrb[3].mxu0  ;;  %v569_v52 = vpop.f32.mrb[4].mxu1 }
 0x48b   : > { %v570_v53 = vadd.f32 %v569_v52, %v496_v50  ;;  %v1075_v54 = vpop.f32.mrb[5].mxu1 }
 0x48d   : > { %v1080_v55 = vpop.f32.mrb[4].mxu0 }
 0x48e   : > { %v657_v56 = vadd.f32 %v1080_v55, %v233_v22  ;;  %v651_v57 = vpop.f32.mrb[5].mxu0 }
 0x48f   : > { %v652_v58 = vadd.f32 %v651_v57, %v233_v22 }
 0x490   : > { %v663_v59 = vsel %vm239_vm2, %v657_v56, -inf }
 0x491   : > { %664 = vmax.xlane.f32.xlu0 %v663_v59  ;;  %v660_v60 = vsel %vm239_vm2, %v652_v58, -inf }
 0x492   : > { %661 = vmax.xlane.f32.xlu1 %v660_v60 }
 0x4a7   : > { %680 = vrot.lane.b32.xlu0 %v1334_v12, %s1240_s26 }
 0x51e   : > { %v665_v61 = vpop.xlane.xlu0 %664 }
 0x51f   : > { %v667_v62 = vsub.f32 %v657_v56, %v665_v61  ;;  %v662_v63 = vpop.xlane.xlu1 %661 }
 0x520   : > { %v666_v0 = vsub.f32 %v652_v58, %v662_v63 }
 0x521   : > { %v670_v1 = vmul.f32 1.442695, %v667_v62 }
 0x522   : > { %v668_v2 = vmul.f32 1.442695, %v666_v0  ;;  %v681_v3 = vpop.permute.xlu0 %680 }
 0x523   : > { %1081 = vmatprep.subr.mxu1 %v681_v3 }
 0x524   : > { %1159 = vpow2.f32 %v668_v2  ;;  %1082 = vmatpush3.msra.mxu1 %v681_v3 }
 0x525   : > { %1161 = vpow2.f32 %v670_v1  ;;  %1091 = vmatprep.subr.mxu1 %v1233_v6 }
 0x52e   : > { %v1160_v4 = vpop.eup %1159 }
 0x52f   : > { %v1162_v5 = vpop.eup %1161  ;;  %1083 = vmatprep.mubr.msk.f32.mxu1 %vm239_vm2, %v1160_v4  ;;  %v672_v7 = vsel %vm239_vm2, %v1160_v4, 0.0 }
 0x530   : > { %1084 = vmatmul.mubr.msk.f32.vlgmr.msra.gmra.mrb[6].mxu1 %vm239_vm2, %v1162_v5  ;;  %673 = vadd.xlane.f32.xlu1 %v672_v7  ;;  %v675_v8 = vsel %vm239_vm2, %v1162_v5, 0.0 }
 0x531   : > { %1093 = vmatprep.mubr.msk.f32.mxu1 %vm1232_vm0, %v1233_v6  ;;  %1092 = vmatpush3.msra.mxu1 %v148_v10 }
 0x534   : > { %676 = vadd.xlane.f32.xlu1 %v675_v8 }
 0x5bd   : > { %v674_v11 = vpop.xlane.xlu1 %673 }
 0x5c1   : > { %v677_v12 = vpop.xlane.xlu1 %676 }
 0x5c2   : > { %1163 = vrcp.f32 %v677_v12 }
 0x5c3   : > { %1165 = vrcp.f32 %v674_v11 }
 0x5cc   : > { %v1164_v13 = vpop.eup %1163 }
 0x5cd   : > { %v1166_v14 = vpop.eup %1165 }
 0x603   : > { %v1085_v6 = vpop.f32.mrb[6].mxu1 }
 0x604   : > { %v765_v15 = vmul.f32 %v1164_v13, %v1085_v6  ;;  %v755_v16 = vpop.f32.mrb[7].mxu1 }
 0x605   : > { %v764_v17 = vmul.f32 %v1166_v14, %v755_v16 }
 0x606   : > { %1094 = vmatmul.mubr.msk.f32.vlgmr.msra.gmra.mrb[8].mxu1 %vm239_vm2, %v765_v15 }
 0x607   : > { %1089 = vmatmul.mubr.msk.f32.vlgmr.msra.gmra.mrb[6].mxu0 %vm239_vm2, %v764_v17 }
 0x6d9   : > { %v909_v18 = vpop.f32.mrb[8].mxu1 }
 0x6da   : > { %v835_v19 = vpop.f32.mrb[6].mxu0  ;;  %v1095_v20 = vpop.f32.mrb[9].mxu1 }
 0x6db   : > { %v839_v21 = vadd.f32 %v835_v19, %v570_v53  ;;  %v1090_v22 = vpop.f32.mrb[7].mxu0 }
 0x6dd   : > { %v913_v24 = vadd.f32 %v909_v18, %v839_v21 }
 0x6df   : > { %v918_v25 = vadd.f32 %v1015_v23, %v913_v24 }
 0x6e1   : > { %919 = vst.msk [vmem:[%s134_s8] sm:$0xff] %vm154_vm1, %v918_v25 }
 0x6e2   : > { %1180 = shalt.err (!%p1177_p3)
}
 0x6e3   : > { %s1181_s26 = scalar_lea.hbm %s1395_s21, 128  ;;  %s1185_s29 = scalar_lea.hbm %s1440_s2, 256 }
 0x6e4   : > { %p1182_p4 = scmp.ne.s32.totalorder %s1395_s21, %s1181_s26  ;;  %p1186_p9 = scmp.lt.u32.totalorder %s1395_s21, %s1440_s2 }
 0x6e5   : > { %p1187_p10 = scmp.lt.u32.totalorder %s1185_s29, %s1181_s26  ;;  %p1189_p12 = scmp.lt.u32.totalorder %s1181_s26, %s1395_s21 }
 0x6e6   : > { %p1183_p7 = pnand %p1182_p4, %p1295_p5 }
 0x6e7   : > { %p1188_p11 = por %p1187_p10, %p1186_p9 }
 0x6e8   : > { %p1184_p8 = pneg %p1183_p7 }
 0x6e9   : > { %p1190_p13 = por %p1189_p12, %p1188_p11 }
 0x6eb   : > { %p1191_p0 = pnand %p1190_p13, %p1184_p8 }
 0x6ed   : > { %1194 = shalt.err (!%p1191_p0)
}
 0x6ee   : > { %1102 = dma.vmem_to_hbm [thread:$0]  (%p1295_p5), %s1397_s14, 128, %s1395_s21, %s921_s22  }
 0x6ef PF: > { %p1108_p1 = scmp.ge.s32.totalorder %s1229_s12, 2  ;;  %s946_s4 = sand.u32 1, %s1217_s9  }
 0x6f0   : > { %s947_s5 = scalar_lea.sflag [#allocation3], %s946_s4 }
 0x6f1   : > { %p1105_p2 = pnand %p1108_p1, %p1299_p6 }
 0x6f3   : > { %1212 = dma.done.wait (!%p1105_p2), %s947_s5, 128  }
 0x6f4   : > { %1214 = vsyncadd (!%p1105_p2), %s947_s5, 4294967168  ;;  %p12_p3 = scmp.ge.s32.totalorder %s1282_s15, 4   ;;  %s1443_s9 = smov %s1221_s10 }
 0x6f5   : > { %s1444_s10 = smov %s1225_s11  ;;  %s1445_s11 = smov %s1293_s18 }
 0x6f6   : > { %s1446_s12 = smov %s1282_s15  ;;  %14 = sbr.rel (!%p12_p3) target bundleno = 3 (0x3), region = 63 }
 0x6fd   :  { %952 = vsyncpa [#allocation3], 1 }
 0x6fe   :  { %954 = vsyncpa [#allocation3 + $0x1], 1 }

</bundles_post_ra>
